<compile_context>
chip_gen: v7x
topology: tpu7x:2x2x1
jax: 0.10.0
libtpu: 0.0.40
codegen_flags: <defaults>
</compile_context>

<pallas_src>
import functools

import jax
import jax.numpy as jnp
from jax import lax
from jax.experimental import pallas as pl
from jax.experimental.pallas import tpu as pltpu

LN_EPS = 1e-5


def _msa_transition_kernel(xp_ref, gamma_ref, beta_ref, seg_ref,
                           w1_ref, b1_ref, w2_ref, b2_ref, o_ref):
    # xp_ref: (tm_p, Dp) tile; each row holds PACK original feature rows of width D.
    x = xp_ref[...].astype(jnp.float32)

    # Segmented LayerNorm: seg_ref is a (Dp, Dp) block-diagonal averaging matrix
    # (blocks filled with 1/D), so x @ seg == per-segment mean, already broadcast
    # across its own segment's lanes.  Stats stay in f32.
    seg = seg_ref[...]
    mu = jnp.dot(x, seg, preferred_element_type=jnp.float32)
    d = x - mu
    var = jnp.dot(d * d, seg, preferred_element_type=jnp.float32)
    xn = d * lax.rsqrt(var + LN_EPS)
    xn = xn * gamma_ref[...] + beta_ref[...]

    # Linear 1 (block-diag packed: Dp -> PACK*Dh), bf16 operands, f32 accumulate.
    h = jnp.dot(xn.astype(jnp.bfloat16), w1_ref[...],
                preferred_element_type=jnp.float32) + b1_ref[...]
    h = jnp.maximum(h, 0.0)  # ReLU

    # Linear 2 (block-diag packed: PACK*Dh -> Dp)
    y = jnp.dot(h.astype(jnp.bfloat16), w2_ref[...],
                preferred_element_type=jnp.float32) + b2_ref[...]
    o_ref[...] = y.astype(o_ref.dtype)


def _round_up(n, m):
    return ((n + m - 1) // m) * m


@functools.partial(jax.jit, static_argnames=("tile_rows",))
def msa_transition(x, gamma, beta, w1, b1, w2, b2, *, tile_rows=1024):
    """x: [..., D].  w1: [D, D*H], w2: [D*H, D] (already transposed vs PyTorch)."""
    orig_shape = x.shape
    D = orig_shape[-1]
    Dh = w1.shape[1]
    rows = 1
    for s in orig_shape[:-1]:
        rows *= s

    # Lane packing factor: fold PACK consecutive rows into one 128-wide lane row.
    PACK = 128 // D if (D <= 128 and 128 % D == 0) else 1
    Dp = D * PACK
    Hp = Dh * PACK

    # Tile sizing: tile_rows counts ORIGINAL rows; the packed tile height must be
    # a multiple of 8 sublanes.  Clamp for small inputs, zero-pad the tail tile.
    base = 8 * PACK
    tile_rows = max(base, (tile_rows // base) * base)
    eff_tile = min(tile_rows, _round_up(rows, base))
    rows_pad = _round_up(rows, eff_tile)
    tm_p = eff_tile // PACK
    grid = (rows_pad // eff_tile,)

    x2 = x.reshape(rows, D)
    if rows_pad != rows:
        x2 = jnp.concatenate(
            [x2, jnp.zeros((rows_pad - rows, D), dtype=x2.dtype)], axis=0)
    xp = x2.reshape(rows_pad // PACK, Dp)  # free, row-major reshape

    # Pack parameters for the lane-dense layout (tiny, done per call under jit).
    eye = jnp.eye(PACK, dtype=jnp.float32)
    seg = jnp.kron(eye, jnp.full((D, D), 1.0 / D, dtype=jnp.float32))   # (Dp, Dp)
    w1p = jnp.kron(eye, w1.astype(jnp.float32)).astype(jnp.bfloat16)    # (Dp, Hp)
    w2p = jnp.kron(eye, w2.astype(jnp.float32)).astype(jnp.bfloat16)    # (Hp, Dp)
    gamma_p = jnp.tile(gamma.astype(jnp.float32), PACK).reshape(1, Dp)
    beta_p = jnp.tile(beta.astype(jnp.float32), PACK).reshape(1, Dp)
    b1p = jnp.tile(b1.astype(jnp.float32), PACK).reshape(1, Hp)
    b2p = jnp.tile(b2.astype(jnp.float32), PACK).reshape(1, Dp)

    out_p = pl.pallas_call(
        _msa_transition_kernel,
        out_shape=jax.ShapeDtypeStruct((rows_pad // PACK, Dp), x.dtype),
        grid_spec=pltpu.PrefetchScalarGridSpec(
            num_scalar_prefetch=0,
            grid=grid,
            in_specs=[
                pl.BlockSpec((tm_p, Dp), lambda i: (i, 0)),   # packed x rows tile
                pl.BlockSpec((1, Dp), lambda i: (0, 0)),      # gamma (tiled)
                pl.BlockSpec((1, Dp), lambda i: (0, 0)),      # beta (tiled)
                pl.BlockSpec((Dp, Dp), lambda i: (0, 0)),     # segment-avg matrix
                pl.BlockSpec((Dp, Hp), lambda i: (0, 0)),     # W1 (block-diag, bf16)
                pl.BlockSpec((1, Hp), lambda i: (0, 0)),      # b1 (tiled)
                pl.BlockSpec((Hp, Dp), lambda i: (0, 0)),     # W2 (block-diag, bf16)
                pl.BlockSpec((1, Dp), lambda i: (0, 0)),      # b2 (tiled)
            ],
            out_specs=pl.BlockSpec((tm_p, Dp), lambda i: (i, 0)),
        ),
        compiler_params=pltpu.CompilerParams(
            dimension_semantics=("parallel",)),
    )(xp, gamma_p, beta_p, seg, w1p, b1p, w2p, b2p)

    out2 = out_p.reshape(rows_pad, D)
    if rows_pad != rows:
        out2 = out2[:rows]
    return out2.reshape(orig_shape)


def _reference(x, gamma, beta, w1, b1, w2, b2):
    xf = x.astype(jnp.float32)
    mu = jnp.mean(xf, axis=-1, keepdims=True)
    var = jnp.mean((xf - mu) ** 2, axis=-1, keepdims=True)
    xn = (xf - mu) * lax.rsqrt(var + LN_EPS) * gamma + beta
    h = jnp.maximum(xn @ w1 + b1, 0.0)
    return (h @ w2 + b2).astype(x.dtype)


if __name__ == "__main__":
    # Config (mirrors global_config['msa_dim'] and msa_transition_config['hidden_dim'])
    msa_dim = 32
    hidden_dim = 4
    Dh = msa_dim * hidden_dim  # 128

    # Small MSA-shaped input: [batch=2, n_seq=8, n_res=16, msa_dim=32] -> 256 rows
    key = jax.random.PRNGKey(0)
    kx, kw1, kb1, kw2, kb2 = jax.random.split(key, 5)
    x = jax.random.normal(kx, (2, 8, 16, msa_dim), dtype=jnp.float32)

    # Deterministic parameter init (PyTorch Linear-style uniform bounds), stored as
    # (in, out) so the kernel computes x @ W + b.
    bound1 = 1.0 / jnp.sqrt(msa_dim)
    w1 = jax.random.uniform(kw1, (msa_dim, Dh), jnp.float32, -bound1, bound1)
    b1 = jax.random.uniform(kb1, (Dh,), jnp.float32, -bound1, bound1)
    bound2 = 1.0 / jnp.sqrt(Dh)
    w2 = jax.random.uniform(kw2, (Dh, msa_dim), jnp.float32, -bound2, bound2)
    b2 = jax.random.uniform(kb2, (msa_dim,), jnp.float32, -bound2, bound2)
    gamma = jnp.ones((msa_dim,), jnp.float32)   # nn.LayerNorm default weight
    beta = jnp.zeros((msa_dim,), jnp.float32)   # nn.LayerNorm default bias

    out = msa_transition(x, gamma, beta, w1, b1, w2, b2)
    out = jax.block_until_ready(out)

    ref = _reference(x, gamma, beta, w1, b1, w2, b2)
    assert out.shape == x.shape and out.dtype == x.dtype
    # bf16 matmul operands inside the kernel -> loosened tolerance vs the f32 reference.
    assert jnp.allclose(out, ref, atol=2e-2, rtol=2e-2), "mismatch vs JAX reference"

    print("KERNEL_OK")
</pallas_src>

<mosaic_0001>
module attributes {stable_mosaic.version = 11 : i64} {
  func.func @_msa_transition_kernel(%arg0: i32, %arg1: memref<64x128xf32, #tpu.memory_space<vmem>>, %arg2: memref<1x128xf32, #tpu.memory_space<vmem>>, %arg3: memref<1x128xf32, #tpu.memory_space<vmem>>, %arg4: memref<128x128xf32, #tpu.memory_space<vmem>>, %arg5: memref<128x512xbf16, #tpu.memory_space<vmem>>, %arg6: memref<1x512xf32, #tpu.memory_space<vmem>>, %arg7: memref<512x128xbf16, #tpu.memory_space<vmem>>, %arg8: memref<1x128xf32, #tpu.memory_space<vmem>>, %arg9: memref<64x128xf32, #tpu.memory_space<vmem>>) attributes {dimension_semantics = [#tpu.dimension_semantics<parallel>], iteration_bounds = array<i64: 1>, scalar_prefetch = 0 : i64, scratch_operands = 0 : i64, tpu.core_type = #tpu.core_type<tc>, window_params = [{transform_indices = @transform_0, window_bounds = array<i64: 64, 128>}, {pipeline_mode = #tpu.pipeline_mode<synchronous>, transform_indices = @transform_1, window_bounds = array<i64: 1, 128>}, {pipeline_mode = #tpu.pipeline_mode<synchronous>, transform_indices = @transform_2, window_bounds = array<i64: 1, 128>}, {pipeline_mode = #tpu.pipeline_mode<synchronous>, transform_indices = @transform_3, window_bounds = array<i64: 128, 128>}, {pipeline_mode = #tpu.pipeline_mode<synchronous>, transform_indices = @transform_4, window_bounds = array<i64: 128, 512>}, {pipeline_mode = #tpu.pipeline_mode<synchronous>, transform_indices = @transform_5, window_bounds = array<i64: 1, 512>}, {pipeline_mode = #tpu.pipeline_mode<synchronous>, transform_indices = @transform_6, window_bounds = array<i64: 512, 128>}, {pipeline_mode = #tpu.pipeline_mode<synchronous>, transform_indices = @transform_7, window_bounds = array<i64: 1, 128>}, {transform_indices = @transform_8, window_bounds = array<i64: 64, 128>}]} {
    %c0 = arith.constant 0 : index
    %c0_0 = arith.constant 0 : index
    %0 = vector.load %arg1[%c0, %c0_0] : memref<64x128xf32, #tpu.memory_space<vmem>>, vector<64x128xf32>
    %c0_1 = arith.constant 0 : index
    %c0_2 = arith.constant 0 : index
    %1 = vector.load %arg4[%c0_1, %c0_2] : memref<128x128xf32, #tpu.memory_space<vmem>>, vector<128x128xf32>
    %cst = arith.constant dense<0.000000e+00> : vector<64x128xf32>
    %2 = tpu.matmul %0, %1, %cst {dimension_numbers = #tpu.dot_dimension_numbers<[1], [0], [0], [1], [0, 0, 1, 1], [], []>} : vector<64x128xf32>, vector<128x128xf32>, vector<64x128xf32> -> vector<64x128xf32>
    %3 = arith.subf %0, %2 : vector<64x128xf32>
    %4 = arith.mulf %3, %3 : vector<64x128xf32>
    %cst_3 = arith.constant dense<0.000000e+00> : vector<64x128xf32>
    %5 = tpu.matmul %4, %1, %cst_3 {dimension_numbers = #tpu.dot_dimension_numbers<[1], [0], [0], [1], [0, 0, 1, 1], [], []>} : vector<64x128xf32>, vector<128x128xf32>, vector<64x128xf32> -> vector<64x128xf32>
    %cst_4 = arith.constant 9.99999974E-6 : f32
    %6 = vector.broadcast %cst_4 : f32 to vector<64x128xf32>
    %7 = arith.addf %5, %6 : vector<64x128xf32>
    %8 = math.rsqrt %7 : vector<64x128xf32>
    %9 = arith.mulf %3, %8 : vector<64x128xf32>
    %c0_5 = arith.constant 0 : index
    %c0_6 = arith.constant 0 : index
    %10 = vector.load %arg2[%c0_5, %c0_6] : memref<1x128xf32, #tpu.memory_space<vmem>>, vector<1x128xf32>
    %11 = vector.broadcast %10 : vector<1x128xf32> to vector<64x128xf32>
    %12 = arith.mulf %9, %11 : vector<64x128xf32>
    %c0_7 = arith.constant 0 : index
    %c0_8 = arith.constant 0 : index
    %13 = vector.load %arg3[%c0_7, %c0_8] : memref<1x128xf32, #tpu.memory_space<vmem>>, vector<1x128xf32>
    %14 = vector.broadcast %13 : vector<1x128xf32> to vector<64x128xf32>
    %15 = arith.addf %12, %14 : vector<64x128xf32>
    %16 = arith.truncf %15 : vector<64x128xf32> to vector<64x128xbf16>
    %c0_9 = arith.constant 0 : index
    %c0_10 = arith.constant 0 : index
    %17 = vector.load %arg5[%c0_9, %c0_10] : memref<128x512xbf16, #tpu.memory_space<vmem>>, vector<128x512xbf16>
    %cst_11 = arith.constant dense<0.000000e+00> : vector<64x512xf32>
    %18 = tpu.matmul %16, %17, %cst_11 {dimension_numbers = #tpu.dot_dimension_numbers<[1], [0], [0], [1], [0, 0, 1, 1], [], []>} : vector<64x128xbf16>, vector<128x512xbf16>, vector<64x512xf32> -> vector<64x512xf32>
    %c0_12 = arith.constant 0 : index
    %c0_13 = arith.constant 0 : index
    %19 = vector.load %arg6[%c0_12, %c0_13] : memref<1x512xf32, #tpu.memory_space<vmem>>, vector<1x512xf32>
    %20 = vector.broadcast %19 : vector<1x512xf32> to vector<64x512xf32>
    %21 = arith.addf %18, %20 : vector<64x512xf32>
    %cst_14 = arith.constant 0.000000e+00 : f32
    %22 = vector.broadcast %cst_14 : f32 to vector<64x512xf32>
    %23 = arith.maximumf %21, %22 : vector<64x512xf32>
    %24 = arith.truncf %23 : vector<64x512xf32> to vector<64x512xbf16>
    %c0_15 = arith.constant 0 : index
    %c0_16 = arith.constant 0 : index
    %25 = vector.load %arg7[%c0_15, %c0_16] : memref<512x128xbf16, #tpu.memory_space<vmem>>, vector<512x128xbf16>
    %cst_17 = arith.constant dense<0.000000e+00> : vector<64x128xf32>
    %26 = tpu.matmul %24, %25, %cst_17 {dimension_numbers = #tpu.dot_dimension_numbers<[1], [0], [0], [1], [0, 0, 1, 1], [], []>} : vector<64x512xbf16>, vector<512x128xbf16>, vector<64x128xf32> -> vector<64x128xf32>
    %c0_18 = arith.constant 0 : index
    %c0_19 = arith.constant 0 : index
    %27 = vector.load %arg8[%c0_18, %c0_19] : memref<1x128xf32, #tpu.memory_space<vmem>>, vector<1x128xf32>
    %28 = vector.broadcast %27 : vector<1x128xf32> to vector<64x128xf32>
    %29 = arith.addf %26, %28 : vector<64x128xf32>
    %c0_20 = arith.constant 0 : index
    %c0_21 = arith.constant 0 : index
    %30 = vector.load %arg9[%c0_20, %c0_21] : memref<64x128xf32, #tpu.memory_space<vmem>>, vector<64x128xf32>
    tpu.vector_store %arg9[%c0_20, %c0_21], %29 {strides = array<i32>} : memref<64x128xf32, #tpu.memory_space<vmem>>, vector<64x128xf32>,
    return
  }
  func.func @transform_0(%arg0: i32) -> (i32, i32) {
    %c0_i32 = arith.constant 0 : i32
    %c0_i32_0 = arith.constant 0 : i32
    return %arg0, %c0_i32 : i32, i32
  }
  func.func @transform_1(%arg0: i32) -> (i32, i32) {
    %c0_i32 = arith.constant 0 : i32
    %c0_i32_0 = arith.constant 0 : i32
    %c0_i32_1 = arith.constant 0 : i32
    return %c0_i32, %c0_i32_0 : i32, i32
  }
  func.func @transform_2(%arg0: i32) -> (i32, i32) {
    %c0_i32 = arith.constant 0 : i32
    %c0_i32_0 = arith.constant 0 : i32
    %c0_i32_1 = arith.constant 0 : i32
    return %c0_i32, %c0_i32_0 : i32, i32
  }
  func.func @transform_3(%arg0: i32) -> (i32, i32) {
    %c0_i32 = arith.constant 0 : i32
    %c0_i32_0 = arith.constant 0 : i32
    %c0_i32_1 = arith.constant 0 : i32
    return %c0_i32, %c0_i32_0 : i32, i32
  }
  func.func @transform_4(%arg0: i32) -> (i32, i32) {
    %c0_i32 = arith.constant 0 : i32
    %c0_i32_0 = arith.constant 0 : i32
    %c0_i32_1 = arith.constant 0 : i32
    return %c0_i32, %c0_i32_0 : i32, i32
  }
  func.func @transform_5(%arg0: i32) -> (i32, i32) {
    %c0_i32 = arith.constant 0 : i32
    %c0_i32_0 = arith.constant 0 : i32
    %c0_i32_1 = arith.constant 0 : i32
    return %c0_i32, %c0_i32_0 : i32, i32
  }
  func.func @transform_6(%arg0: i32) -> (i32, i32) {
    %c0_i32 = arith.constant 0 : i32
    %c0_i32_0 = arith.constant 0 : i32
    %c0_i32_1 = arith.constant 0 : i32
    return %c0_i32, %c0_i32_0 : i32, i32
  }
  func.func @transform_7(%arg0: i32) -> (i32, i32) {
    %c0_i32 = arith.constant 0 : i32
    %c0_i32_0 = arith.constant 0 : i32
    %c0_i32_1 = arith.constant 0 : i32
    return %c0_i32, %c0_i32_0 : i32, i32
  }
  func.func @transform_8(%arg0: i32) -> (i32, i32) {
    %c0_i32 = arith.constant 0 : i32
    %c0_i32_0 = arith.constant 0 : i32
    return %arg0, %c0_i32 : i32, i32
  }
}

</mosaic_0001>

<bundles_post_ra>
// kernel: tile.23
= control target key start
LH: loop header
LB: loop body
LE: loop exit
PB: predicated region body
PF: predicated region fallthrough
CT: control target
= control target key end

     0   :  { %s22_s0 = inlined_call_operand.vmem [shape: f32[32], index: 0, kind: input, shape index: {}]   ;;  %s23_s1 = inlined_call_operand.vmem [shape: f32[4,32], index: 1, kind: output, shape index: {}]  }
   0x1   :  { %v4_v0 = vld [vmem:[%s22_s0] ss:$0 sm:$0xff] }
   0x2   :  { %5 = vst [vmem:[%s23_s1] sm:$0xf] %v4_v0 }

// kernel: tile.24
= control target key start
LH: loop header
LB: loop body
LE: loop exit
PB: predicated region body
PF: predicated region fallthrough
CT: control target
= control target key end

     0   :  { %vm7_vm0 = vcmask 261120   ;;  %s37_s8 = smov 32   ;;  %s38_s9 = smov 64   ;;  %vm13_vm1 = vcmask 1048320   ;;  %vm19_vm2 = vcmask 785920   ;;  %vm25_vm3 = vcmask 523520   ;;  %s55_s0 = inlined_call_operand.vmem [shape: f32[4,32], index: 0, kind: input, shape index: {}]   ;;  %s56_s1 = inlined_call_operand.vmem [shape: f32[1,128], index: 1, kind: output, shape index: {}]  }
   0x1   :  { %v4_v0 = vld [vmem:[%s55_s0] sm:$0xf]  ;;  %s36_s0 = smov 96  }
   0x2   :  { %5 = vst [vmem:[#allocation1] sm:$0xf] %v4_v0 }
   0x9   :  { %v10_v1 = vld [vmem:[#allocation1 + $0x3] sm:$0x1]   ;;  %v22_v2 = vld [vmem:[#allocation1 + $0x1] sm:$0x1]   ;;  %v6_v3 = vld [vmem:[#allocation1] sm:$0x1]  }
   0xa   :  { %11 = vrot.lane.b32.xlu0 %v10_v1, %s36_s0  ;;  %23 = vrot.lane.b32.xlu1 %v22_v2, %s37_s8  ;;  %v16_v4 = vld [vmem:[#allocation1 + $0x2] sm:$0x1]   ;;  %8 = vst.msk [vmem:[#allocation0] sm:$0x1] %vm7_vm0, %v6_v3  }
   0xe   :  { %17 = vrot.lane.b32.xlu0 %v16_v4, %s38_s9 }
  0x7c   :  { %v12_v5 = vpop.permute.xlu0 %11   ;;  %v24_v6 = vpop.permute.xlu1 %23  }
  0x7d   :  { %14 = vst.msk [vmem:[#allocation0] sm:$0x1] %vm13_vm1, %v12_v5  }
  0x80   :  { %v18_v7 = vpop.permute.xlu0 %17  }
  0x81   :  { %20 = vst.msk [vmem:[#allocation0] sm:$0x1] %vm19_vm2, %v18_v7  }
  0x82   :  { %26 = vst.msk [vmem:[#allocation0] sm:$0x1] %vm25_vm3, %v24_v6  }
  0x89   :  { %v30_v8 = vld [vmem:[#allocation0] sm:$0x1] }
  0x8a   :  { %32 = vst [vmem:[%s56_s1] sm:$0x1] %v30_v8 }

// kernel: tile.33
= control target key start
LH: loop header
LB: loop body
LE: loop exit
PB: predicated region body
PF: predicated region fallthrough
CT: control target
= control target key end

     0   :  { %s22_s0 = inlined_call_operand.vmem [shape: f32[128], index: 0, kind: input, shape index: {}]   ;;  %s23_s1 = inlined_call_operand.vmem [shape: f32[4,128], index: 1, kind: output, shape index: {}]  }
   0x1   :  { %v4_v0 = vld [vmem:[%s22_s0] ss:$0 sm:$0xff] }
   0x2   :  { %5 = vst [vmem:[%s23_s1] sm:$0xf] %v4_v0 }

// kernel: msa_transition.1
= control target key start
LH: loop header
LB: loop body
LE: loop exit
PB: predicated region body
PF: predicated region fallthrough
CT: control target
= control target key end

     0   :  { %s2035_s3 = inlined_call_operand.vmem [shape: f32[128,128], index: 3, kind: input, shape index: {}]   ;;  %s2036_s0 = inlined_call_operand.vmem [shape: f32[64,128], index: 0, kind: input, shape index: {}]   ;;  %s2037_s4 = inlined_call_operand.vmem [shape: bf16[128,512], index: 4, kind: input, shape index: {}]   ;;  %s2038_s6 = inlined_call_operand.vmem [shape: bf16[512,128], index: 6, kind: input, shape index: {}]   ;;  %s2039_s1 = inlined_call_operand.vmem [shape: f32[1,128], index: 1, kind: input, shape index: {}]   ;;  %s2040_s2 = inlined_call_operand.vmem [shape: f32[1,128], index: 2, kind: input, shape index: {}]   ;;  %s2041_s5 = inlined_call_operand.vmem [shape: f32[1,512], index: 5, kind: input, shape index: {}]   ;;  %s2042_s7 = inlined_call_operand.vmem [shape: f32[1,128], index: 7, kind: input, shape index: {}]   ;;  %s2043_s8 = inlined_call_operand.vmem [shape: f32[64,128], index: 8, kind: output, shape index: {}]  }
   0x1   :  { %v38_v0 = vld [vmem:[%s2035_s3] sm:$0xff]  ;;  %v39_v1 = vld [vmem:[%s2035_s3 + $0x8] sm:$0xff]  ;;  %v40_v2 = vld [vmem:[%s2035_s3 + $0x10] sm:$0xff] }
   0x2   :  { %v1426_v3 = vpack.c.bf16 %v39_v1, %v38_v0  ;;  %v41_v4 = vld [vmem:[%s2035_s3 + $0x18] sm:$0xff]  ;;  %v42_v6 = vld [vmem:[%s2035_s3 + $0x20] sm:$0xff]  ;;  %v43_v7 = vld [vmem:[%s2035_s3 + $0x28] sm:$0xff] }
   0x3   :  { %v1430_v5 = vpack.c.bf16 %v41_v4, %v40_v2  ;;  %v1434_v8 = vpack.c.bf16 %v43_v7, %v42_v6  ;;  %v1654_v9 = vld [vmem:[%s2036_s0] sm:$0xff]  ;;  %v44_v10 = vld [vmem:[%s2035_s3 + $0x30] sm:$0xff]  ;;  %v45_v11 = vld [vmem:[%s2035_s3 + $0x38] sm:$0xff] }
   0x4   :  { %1427 = vmatprep.subr.bf16.mxu0 %v1426_v3  ;;  %1459 = vmatprep.subr.bf16.mxu1 %v1426_v3  ;;  %v1438_v12 = vpack.c.bf16 %v45_v11, %v44_v10  ;;  %v46_v13 = vld [vmem:[%s2035_s3 + $0x40] sm:$0xff]  ;;  %v47_v14 = vld [vmem:[%s2035_s3 + $0x48] sm:$0xff]  ;;  %v48_v16 = vld [vmem:[%s2035_s3 + $0x50] sm:$0xff] }
   0x5   :  { %1429 = vmatpush3.bf16.msra.mxu0 %v1426_v3  ;;  %1461 = vmatpush3.bf16.msra.mxu1 %v1426_v3  ;;  %v1442_v15 = vpack.c.bf16 %v47_v14, %v46_v13  ;;  %v49_v17 = vld [vmem:[%s2035_s3 + $0x58] sm:$0xff]  ;;  %v50_v19 = vld [vmem:[%s2035_s3 + $0x60] sm:$0xff]  ;;  %v51_v20 = vld [vmem:[%s2035_s3 + $0x68] sm:$0xff] }
   0x6   :  { %1431 = vmatprep.subr.bf16.mxu0 %v1430_v5  ;;  %1463 = vmatprep.subr.bf16.mxu1 %v1430_v5  ;;  %v1446_v18 = vpack.c.bf16 %v49_v17, %v48_v16  ;;  %v1450_v21 = vpack.c.bf16 %v51_v20, %v50_v19  ;;  %v52_v22 = vld [vmem:[%s2035_s3 + $0x70] sm:$0xff]  ;;  %v53_v23 = vld [vmem:[%s2035_s3 + $0x78] sm:$0xff]  ;;  %v31_v25 = vld [vmem:[%s2036_s0 + $0x8] sm:$0xff] }
   0x7   :  { %1370 = vmatprep.mubr.f32.mxu0 %v1654_v9  ;;  %v1454_v24 = vpack.c.bf16 %v53_v23, %v52_v22  ;;  %v32_v26 = vld [vmem:[%s2036_s0 + $0x10] sm:$0xff]  ;;  %v33_v27 = vld [vmem:[%s2036_s0 + $0x18] sm:$0xff]  ;;  %v34_v28 = vld [vmem:[%s2036_s0 + $0x20] sm:$0xff] }
   0x8   :  { %v35_v29 = vld [vmem:[%s2036_s0 + $0x28] sm:$0xff]  ;;  %v36_v30 = vld [vmem:[%s2036_s0 + $0x30] sm:$0xff]  ;;  %v37_v31 = vld [vmem:[%s2036_s0 + $0x38] sm:$0xff] }
   0x9   :  { %1433 = vmatpush3.bf16.msra.mxu0 %v1430_v5  ;;  %1465 = vmatpush3.bf16.msra.mxu1 %v1430_v5  ;;  %v1491_v32 = vld [vmem:[%s2037_s4] ss:$16 sps:$4 sm:$0xff]   ;;  %v1493_v33 = vld [vmem:[%s2037_s4 + $0x4] ss:$16 sps:$4 sm:$0xff]   ;;  %v1496_v34 = vld [vmem:[%s2037_s4 + $0xc] ss:$16 sps:$4 sm:$0xff]  }
   0xa   :  { %1435 = vmatprep.subr.bf16.mxu0 %v1434_v8  ;;  %1467 = vmatprep.subr.bf16.mxu1 %v1434_v8  ;;  %v1499_v35 = vld [vmem:[%s2037_s4 + $0x24] ss:$16 sps:$4 sm:$0xff]   ;;  %v1497_v36 = vld [vmem:[%s2037_s4 + $0x20] ss:$16 sps:$4 sm:$0xff]   ;;  %v1494_v45 = vld [vmem:[%s2037_s4 + $0x8] ss:$16 sps:$4 sm:$0xff]  }
   0xb   :  { %v1505_v37 = vld [vmem:[%s2037_s4 + $0x44] ss:$16 sps:$4 sm:$0xff]   ;;  %v1503_v38 = vld [vmem:[%s2037_s4 + $0x40] ss:$16 sps:$4 sm:$0xff]   ;;  %v1502_v49 = vld [vmem:[%s2037_s4 + $0x2c] ss:$16 sps:$4 sm:$0xff]  }
   0xc   :  { %v1500_v54 = vld [vmem:[%s2037_s4 + $0x28] ss:$16 sps:$4 sm:$0xff]   ;;  %v1508_v57 = vld [vmem:[%s2037_s4 + $0x4c] ss:$16 sps:$4 sm:$0xff]   ;;  %v1511_v4 = vld [vmem:[%s2037_s4 + $0x64] ss:$16 sps:$4 sm:$0xff]  }
   0xd   :  { %1437 = vmatpush3.bf16.msra.mxu0 %v1434_v8  ;;  %1469 = vmatpush3.bf16.msra.mxu1 %v1434_v8  ;;  %v1506_v62 = vld [vmem:[%s2037_s4 + $0x48] ss:$16 sps:$4 sm:$0xff]   ;;  %v1514_v5 = vld [vmem:[%s2037_s4 + $0x6c] ss:$16 sps:$4 sm:$0xff]   ;;  %v1509_v6 = vld [vmem:[%s2037_s4 + $0x60] ss:$16 sps:$4 sm:$0xff]  }
   0xe   :  { %1439 = vmatprep.subr.bf16.mxu0 %v1438_v12  ;;  %1471 = vmatprep.subr.bf16.mxu1 %v1438_v12  ;;  %v1512_v7 = vld [vmem:[%s2037_s4 + $0x68] ss:$16 sps:$4 sm:$0xff]   ;;  %v1517_v8 = vld [vmem:[%s2037_s4 + $0x84] ss:$16 sps:$4 sm:$0xff]   ;;  %v1515_v10 = vld [vmem:[%s2037_s4 + $0x80] ss:$16 sps:$4 sm:$0xff]  }
   0xf   :  { %v1518_v11 = vld [vmem:[%s2037_s4 + $0x88] ss:$16 sps:$4 sm:$0xff]   ;;  %v1526_v13 = vld [vmem:[%s2037_s4 + $0xac] ss:$16 sps:$4 sm:$0xff]   ;;  %v1521_v14 = vld [vmem:[%s2037_s4 + $0xa0] ss:$16 sps:$4 sm:$0xff]  }
  0x10   :  { %v1529_v16 = vld [vmem:[%s2037_s4 + $0xc4] ss:$16 sps:$4 sm:$0xff]   ;;  %v1532_v17 = vld [vmem:[%s2037_s4 + $0xcc] ss:$16 sps:$4 sm:$0xff]   ;;  %v1530_v19 = vld [vmem:[%s2037_s4 + $0xc8] ss:$16 sps:$4 sm:$0xff]  }
  0x11   :  { %1441 = vmatpush3.bf16.msra.mxu0 %v1438_v12  ;;  %1473 = vmatpush3.bf16.msra.mxu1 %v1438_v12  ;;  %v1523_v12 = vld [vmem:[%s2037_s4 + $0xa4] ss:$16 sps:$4 sm:$0xff]   ;;  %v1533_v20 = vld [vmem:[%s2037_s4 + $0xe0] ss:$16 sps:$4 sm:$0xff]   ;;  %v1536_v22 = vld [vmem:[%s2037_s4 + $0xe8] ss:$16 sps:$4 sm:$0xff]  }
  0x12   :  { %1443 = vmatprep.subr.bf16.mxu0 %v1442_v15  ;;  %1475 = vmatprep.subr.bf16.mxu1 %v1442_v15  ;;  %v1538_v23 = vld [vmem:[%s2037_s4 + $0xec] ss:$16 sps:$4 sm:$0xff]  }
  0x15   :  { %1445 = vmatpush3.bf16.msra.mxu0 %v1442_v15  ;;  %1477 = vmatpush3.bf16.msra.mxu1 %v1442_v15  ;;  %v1524_v15 = vld [vmem:[%s2037_s4 + $0xa8] ss:$16 sps:$4 sm:$0xff]  }
  0x16   :  { %1447 = vmatprep.subr.bf16.mxu0 %v1446_v18  ;;  %1479 = vmatprep.subr.bf16.mxu1 %v1446_v18 }
  0x19   :  { %1449 = vmatpush3.bf16.msra.mxu0 %v1446_v18  ;;  %1481 = vmatpush3.bf16.msra.mxu1 %v1446_v18  ;;  %v1527_v18 = vld [vmem:[%s2037_s4 + $0xc0] ss:$16 sps:$4 sm:$0xff]  }
  0x1a   :  { %1451 = vmatprep.subr.bf16.mxu0 %v1450_v21  ;;  %1483 = vmatprep.subr.bf16.mxu1 %v1450_v21 }
  0x1d   :  { %1453 = vmatpush3.bf16.msra.mxu0 %v1450_v21  ;;  %1485 = vmatpush3.bf16.msra.mxu1 %v1450_v21  ;;  %v1535_v21 = vld [vmem:[%s2037_s4 + $0xe4] ss:$16 sps:$4 sm:$0xff]  }
  0x1e   :  { %1455 = vmatprep.subr.bf16.mxu0 %v1454_v24  ;;  %1487 = vmatprep.subr.bf16.mxu1 %v1454_v24 }
  0x21   :  { %1457 = vmatpush3.bf16.msra.mxu0 %v1454_v24  ;;  %1489 = vmatpush3.bf16.msra.mxu1 %v1454_v24  ;;  %v1587_v24 = vmov 0  }
  0x22   :  { %544 = vmatprep.subr.bf16.mxu0 %v1493_v33  ;;  %617 = vmatprep.subr.bf16.mxu1 %v1496_v34 }
  0x24   :  { %1371 = vmatmul.mubr.f32.vlgmr.msra.gmra.mrb[0].mxu0 %v31_v25 }
  0x25   :  { %1373 = vmatprep.mubr.f32.mxu0 %v32_v26  ;;  %545 = vmatpush1.bf16.msra.mxu0 %v1491_v32 }
  0x26   :  { %546 = vmatprep.subr.bf16.mxu0 %v1499_v35 }
  0x28   :  { %1374 = vmatmul.mubr.f32.gmra.mrb[2].mxu0 %v33_v27 }
  0x29   :  { %1376 = vmatprep.mubr.f32.mxu0 %v34_v28  ;;  %547 = vmatpush1.bf16.msra.mxu0 %v1497_v36 }
  0x2a   :  { %548 = vmatprep.subr.bf16.mxu0 %v1505_v37 }
  0x2c   :  { %1377 = vmatmul.mubr.f32.gmra.mrb[4].mxu0 %v35_v29 }
  0x2d   :  { %1379 = vmatprep.mubr.f32.mxu0 %v36_v30  ;;  %549 = vmatpush1.bf16.msra.mxu0 %v1503_v38 }
  0x2e   :  { %550 = vmatprep.subr.bf16.mxu0 %v1511_v4  ;;  %v1542_v4 = vld [vmem:[%s2038_s6 + $0x80] sm:$0xff]  }
  0x30   :  { %1380 = vmatmul.mubr.f32.gmra.mrb[6].mxu0 %v37_v31 }
  0x31   :  { %551 = vmatpush1.bf16.msra.mxu0 %v1509_v6  ;;  %576 = vmatprep.mubr.bf16.mxu0 %v1587_v24 }
  0x32   :  { %552 = vmatprep.subr.bf16.mxu0 %v1517_v8 }
  0x35   :  { %553 = vmatpush1.bf16.msra.mxu0 %v1515_v10 }
  0x36   :  { %554 = vmatprep.subr.bf16.mxu0 %v1523_v12 }
  0x39   :  { %555 = vmatpush1.bf16.msra.mxu0 %v1521_v14  ;;  %v1546_v14 = vld [vmem:[%s2038_s6 + $0x88] sm:$0xff]  }
  0x3a   :  { %556 = vmatprep.subr.bf16.mxu0 %v1529_v16 }
  0x3d   :  { %557 = vmatpush1.bf16.msra.mxu0 %v1527_v18  ;;  %v1549_v18 = vld [vmem:[%s2038_s6 + $0xd0] sm:$0xff]  }
  0x3e   :  { %558 = vmatprep.subr.bf16.mxu0 %v1535_v21 }
  0x41   :  { %559 = vmatpush1.bf16.msra.mxu0 %v1533_v20 }
  0xf7   :  { %v1372_v39 = vpop.f32.mrb[0].mxu0 }
  0xf8   :  { %v1729_v40 = vsub.f32 %v31_v25, %v1372_v39  ;;  %v120_v41 = vpop.f32.mrb[1].mxu0  ;;  %v1539_v25 = vld [vmem:[%s2038_s6 + $0x40] sm:$0xff]  }
  0xf9   :  { %v1732_v42 = vsub.f32 %v1654_v9, %v120_v41  ;;  %v1520_v9 = vld [vmem:[%s2037_s4 + $0x8c] ss:$16 sps:$4 sm:$0xff]   ;;  %1258 = vmatprep.subr.bf16.mxu0 %v1539_v25  ;;  %v1550_v25 = vld [vmem:[%s2038_s6 + $0x90] sm:$0xff]  }
  0xfa   :  { %v168_v46 = vmul.f32 %v1729_v40, %v1729_v40 }
  0xfb   :  { %v1375_v43 = vpop.f32.mrb[2].mxu0  ;;  %v167_v44 = vmul.f32 %v1732_v42, %v1732_v42 }
  0xfc   :  { %v1741_v47 = vsub.f32 %v33_v27, %v1375_v43  ;;  %v130_v48 = vpop.f32.mrb[3].mxu0  ;;  %v1143_v43 = vld [vmem:[%s2039_s1] ss:$0 sm:$0xff] }
  0xfd   :  { %v1746_v50 = vsub.f32 %v32_v26, %v130_v48  ;;  %1414 = vmatprep.mubr.f32.mxu1 %v167_v44  ;;  %v1541_v26 = vld [vmem:[%s2038_s6 + $0xc0] sm:$0xff]  }
  0xfe   :  { %v170_v51 = vmul.f32 %v1741_v47, %v1741_v47  ;;  %1415 = vmatmul.mubr.f32.vlgmr.msra.gmra.mrb[0].mxu1 %v168_v46 }
  0xff   :  { %v169_v52 = vmul.f32 %v1746_v50, %v1746_v50  ;;  %v1378_v53 = vpop.f32.mrb[4].mxu0  ;;  %618 = vmatpush1.bf16.msra.mxu1 %v1494_v45 }
 0x100   :  { %v1755_v55 = vsub.f32 %v35_v29, %v1378_v53  ;;  %v140_v56 = vpop.f32.mrb[5].mxu0  ;;  %619 = vmatprep.subr.bf16.mxu1 %v1502_v49 }
 0x101   :  { %v1760_v58 = vsub.f32 %v34_v28, %v140_v56  ;;  %1417 = vmatprep.mubr.f32.mxu1 %v169_v52  ;;  %v1144_v52 = vld [vmem:[%s2040_s2] ss:$0 sm:$0xff] }
 0x102   :  { %v172_v59 = vmul.f32 %v1755_v55, %v1755_v55  ;;  %1418 = vmatmul.mubr.f32.gmra.mrb[2].mxu1 %v170_v51 }
 0x103   :  { %v171_v60 = vmul.f32 %v1760_v58, %v1760_v58  ;;  %v1381_v61 = vpop.f32.mrb[6].mxu0  ;;  %620 = vmatpush1.bf16.msra.mxu1 %v1500_v54 }
 0x104   :  { %v1769_v63 = vsub.f32 %v37_v31, %v1381_v61  ;;  %v150_v0 = vpop.f32.mrb[7].mxu0  ;;  %621 = vmatprep.subr.bf16.mxu1 %v1508_v57 }
 0x105   :  { %v1771_v1 = vsub.f32 %v36_v30, %v150_v0  ;;  %1420 = vmatprep.mubr.f32.mxu1 %v171_v60 }
 0x106   :  { %v174_v2 = vmul.f32 %v1769_v63, %v1769_v63  ;;  %1421 = vmatmul.mubr.f32.gmra.mrb[4].mxu1 %v172_v59 }
 0x107   :  { %v173_v3 = vmul.f32 %v1771_v1, %v1771_v1  ;;  %622 = vmatpush1.bf16.msra.mxu1 %v1506_v62 }
 0x108   :  { %623 = vmatprep.subr.bf16.mxu1 %v1514_v5 }
 0x109   :  { %1423 = vmatprep.mubr.f32.mxu1 %v173_v3  ;;  %v1540_v3 = vld [vmem:[%s2038_s6] sm:$0xff]  }
 0x10a   :  { %1424 = vmatmul.mubr.f32.gmra.mrb[6].mxu1 %v174_v2 }
 0x10b   :  { %624 = vmatpush1.bf16.msra.mxu1 %v1512_v7  ;;  %649 = vmatprep.mubr.bf16.mxu1 %v1587_v24 }
 0x10c   :  { %625 = vmatprep.subr.bf16.mxu1 %v1520_v9 }
 0x10f   :  { %626 = vmatpush1.bf16.msra.mxu1 %v1518_v11 }
 0x110   :  { %627 = vmatprep.subr.bf16.mxu1 %v1526_v13  ;;  %v1544_v13 = vld [vmem:[%s2038_s6 + $0x8] sm:$0xff]  }
 0x113   :  { %628 = vmatpush1.bf16.msra.mxu1 %v1524_v15 }
 0x114   :  { %629 = vmatprep.subr.bf16.mxu1 %v1532_v17  ;;  %v1547_v17 = vld [vmem:[%s2038_s6 + $0x50] sm:$0xff]  }
 0x117   :  { %630 = vmatpush1.bf16.msra.mxu1 %v1530_v19 }
 0x118   :  { %631 = vmatprep.subr.bf16.mxu1 %v1538_v23 }
 0x11b   :  { %632 = vmatpush1.bf16.msra.mxu1 %v1536_v22 }
 0x11c   :  { %1298 = vmatprep.subr.bf16.mxu1 %v1541_v26 }
 0x1d1   :  { %v1416_v27 = vpop.f32.mrb[0].mxu1 }
 0x1d2   :  { %v247_v28 = vadd.f32 1e-05, %v1416_v27  ;;  %v241_v29 = vpop.f32.mrb[1].mxu1  ;;  %v1553_v27 = vld [vmem:[%s2038_s6 + $0xd8] sm:$0xff]  }
 0x1d3   :  { %v242_v30 = vadd.f32 1e-05, %v241_v29 }
 0x1d4   :  { %1571 = vrsqrt.f32 %v247_v28 }
 0x1d5   :  { %1573 = vrsqrt.f32 %v242_v30  ;;  %v1419_v31 = vpop.f32.mrb[2].mxu1  ;;  %v1552_v30 = vld [vmem:[%s2038_s6 + $0x18] sm:$0xff]  }
 0x1d6   :  { %v257_v32 = vadd.f32 1e-05, %v1419_v31  ;;  %v251_v33 = vpop.f32.mrb[3].mxu1  ;;  %v1554_v31 = vld [vmem:[%s2038_s6 + $0x98] sm:$0xff]  }
 0x1d7   :  { %v252_v34 = vadd.f32 1e-05, %v251_v33  ;;  %v1557_v33 = vld [vmem:[%s2038_s6 + $0xe0] sm:$0xff]  }
 0x1d8   :  { %1575 = vrsqrt.f32 %v257_v32  ;;  %v1555_v32 = vld [vmem:[%s2038_s6 + $0x60] sm:$0xff]  }
 0x1d9   :  { %1577 = vrsqrt.f32 %v252_v34  ;;  %v1422_v35 = vpop.f32.mrb[4].mxu1  ;;  %v1556_v34 = vld [vmem:[%s2038_s6 + $0x20] sm:$0xff]  }
 0x1da   :  { %v267_v36 = vadd.f32 1e-05, %v1422_v35  ;;  %v261_v37 = vpop.f32.mrb[5].mxu1  ;;  %v1558_v35 = vld [vmem:[%s2038_s6 + $0xa0] sm:$0xff]  }
 0x1db   :  { %v262_v38 = vadd.f32 1e-05, %v261_v37  ;;  %v1561_v37 = vld [vmem:[%s2038_s6 + $0xe8] sm:$0xff]  }
 0x1dc   :  { %1579 = vrsqrt.f32 %v267_v36  ;;  %v1559_v36 = vld [vmem:[%s2038_s6 + $0x68] sm:$0xff]  }
 0x1dd   :  { %1581 = vrsqrt.f32 %v262_v38  ;;  %v1425_v39 = vpop.f32.mrb[6].mxu1  ;;  %v1560_v38 = vld [vmem:[%s2038_s6 + $0x28] sm:$0xff]  }
 0x1de   :  { %v1572_v41 = vpop.eup %1571  ;;  %v277_v44 = vadd.f32 1e-05, %v1425_v39  ;;  %v271_v45 = vpop.f32.mrb[7].mxu1  ;;  %v1562_v39 = vld [vmem:[%s2038_s6 + $0xa8] sm:$0xff]  }
 0x1df   :  { %v1574_v46 = vpop.eup %1573  ;;  %v289_v48 = vmul.f32 %v1572_v41, %v1729_v40  ;;  %v272_v49 = vadd.f32 1e-05, %v271_v45  ;;  %v1565_v41 = vld [vmem:[%s2038_s6 + $0xf0] sm:$0xff]   ;;  %v1567_v45 = vld [vmem:[%s2038_s6 + $0x78] sm:$0xff]  }
 0x1e0   :  { %v288_v51 = vmul.f32 %v1574_v46, %v1732_v42  ;;  %1583 = vrsqrt.f32 %v277_v44  ;;  %v1566_v44 = vld [vmem:[%s2038_s6 + $0xb0] sm:$0xff]   ;;  %v1569_v46 = vld [vmem:[%s2038_s6 + $0xf8] sm:$0xff]  }
 0x1e1   :  { %v304_v53 = vmul.f32 %v1143_v43, %v289_v48  ;;  %1585 = vrsqrt.f32 %v272_v49  ;;  %v1568_v48 = vld [vmem:[%s2038_s6 + $0x38] sm:$0xff]  }
 0x1e2   :  { %v1576_v54 = vpop.eup %1575  ;;  %v303_v56 = vmul.f32 %v1143_v43, %v288_v51  ;;  %v1570_v49 = vld [vmem:[%s2038_s6 + $0xb8] sm:$0xff]   ;;  %v364_v51 = vlaneseq }
 0x1e3   :  { %v1578_v57 = vpop.eup %1577  ;;  %v319_v59 = vadd.f32 %v1144_v52, %v304_v53  ;;  %v291_v60 = vmul.f32 %v1576_v54, %v1741_v47  ;;  %v1543_v47 = vld [vmem:[%s2038_s6 + $0x48] sm:$0xff]  }
 0x1e4   :  { %v318_v61 = vadd.f32 %v1144_v52, %v303_v56  ;;  %v290_v62 = vmul.f32 %v1578_v57, %v1746_v50  ;;  %v1545_v50 = vld [vmem:[%s2038_s6 + $0xc8] sm:$0xff]   ;;  %v362_v56 = vld [vmem:[%s2041_s5] sm:$0xf] }
 0x1e5   :  { %v306_v40 = vmul.f32 %v1143_v43, %v291_v60 }
 0x1e6   :  { %v1580_v0 = vpop.eup %1579  ;;  %v326_v2 = vpack.c.bf16 %v319_v59, %v318_v61  ;;  %v305_v42 = vmul.f32 %v1143_v43, %v290_v62 }
 0x1e7   :  { %v1582_v5 = vpop.eup %1581  ;;  %v321_v6 = vadd.f32 %v1144_v52, %v306_v40  ;;  %v293_v7 = vmul.f32 %v1580_v0, %v1755_v55 }
 0x1e8   :  { %577 = vmatmul.mubr.bf16.vlgmr.msra.gmra.mrb[8].mxu0 %v326_v2  ;;  %650 = vmatmul.mubr.bf16.vlgmr.msra.gmra.mrb[8].mxu1 %v326_v2  ;;  %v320_v8 = vadd.f32 %v1144_v52, %v305_v42  ;;  %v292_v9 = vmul.f32 %v1582_v5, %v1760_v58 }
 0x1e9   :  { %586 = vmatprep.mubr.bf16.mxu0 %v1587_v24  ;;  %659 = vmatprep.mubr.bf16.mxu1 %v1587_v24  ;;  %v308_v10 = vmul.f32 %v1143_v43, %v293_v7 }
 0x1ea   :  { %v1584_v11 = vpop.eup %1583  ;;  %v327_v55 = vpack.c.bf16 %v321_v6, %v320_v8  ;;  %v307_v12 = vmul.f32 %v1143_v43, %v292_v9  ;;  %1259 = vmatpush3.bf16.msra.mxu0 %v1540_v3  ;;  %1299 = vmatpush3.bf16.msra.mxu1 %v1542_v4 }
 0x1eb   :  { %v1586_v15 = vpop.eup %1585  ;;  %v323_v58 = vadd.f32 %v1144_v52, %v308_v10  ;;  %v295_v16 = vmul.f32 %v1584_v11, %v1769_v63  ;;  %1260 = vmatprep.subr.bf16.mxu0 %v1543_v47  ;;  %1300 = vmatprep.subr.bf16.mxu1 %v1545_v50  ;;  %v1548_v63 = vld [vmem:[%s2038_s6 + $0x10] sm:$0xff]  }
 0x1ec   :  { %v322_v19 = vadd.f32 %v1144_v52, %v307_v12  ;;  %v294_v20 = vmul.f32 %v1586_v15, %v1771_v1  ;;  %v1551_v1 = vld [vmem:[%s2038_s6 + $0x58] sm:$0xff]  }
 0x1ed   :  { %v310_v21 = vmul.f32 %v1143_v43, %v295_v16 }
 0x1ee   :  { %v328_v22 = vpack.c.bf16 %v323_v58, %v322_v19  ;;  %v309_v23 = vmul.f32 %v1143_v43, %v294_v20  ;;  %1261 = vmatpush3.bf16.msra.mxu0 %v1544_v13  ;;  %1301 = vmatpush3.bf16.msra.mxu1 %v1546_v14  ;;  %v1564_v43 = vld [vmem:[%s2038_s6 + $0x30] sm:$0xff]  }
 0x1ef   :  { %v325_v26 = vadd.f32 %v1144_v52, %v310_v21  ;;  %1262 = vmatprep.subr.bf16.mxu0 %v1547_v17  ;;  %1302 = vmatprep.subr.bf16.mxu1 %v1549_v18 }
 0x1f0   :  { %587 = vmatmul.mubr.bf16.gmra.mrb[12].mxu0 %v327_v55  ;;  %660 = vmatmul.mubr.bf16.gmra.mrb[12].mxu1 %v327_v55  ;;  %v324_v28 = vadd.f32 %v1144_v52, %v309_v23  ;;  %v365_v52 = vshrl.u32 %v364_v51, 7 }
 0x1f1   :  { %596 = vmatprep.mubr.bf16.mxu0 %v1587_v24  ;;  %669 = vmatprep.mubr.bf16.mxu1 %v1587_v24 }
 0x1f2   :  { %v329_v29 = vpack.c.bf16 %v325_v26, %v324_v28  ;;  %1263 = vmatpush3.bf16.msra.mxu0 %v1548_v63  ;;  %1303 = vmatpush3.bf16.msra.mxu1 %v1550_v25  ;;  %v366_v53 = vsub.s32 0, %v365_v52  ;;  %v374_v54 = vsub.s32 2, %v365_v52  ;;  %v370_v57 = vsub.s32 1, %v365_v52 }
 0x1f3   :  { %1264 = vmatprep.subr.bf16.mxu0 %v1551_v1  ;;  %1304 = vmatprep.subr.bf16.mxu1 %v1553_v27  ;;  %v378_v59 = vsub.s32 3, %v365_v52 }
 0x1f4   :  { %v1958_v60 = vrot.slane %v362_v56, %v366_v53  ;;  %v1960_v61 = vrot.slane %v362_v56, %v374_v54  ;;  %v1962_v62 = vrot.slane %v362_v56, %v370_v57 }
 0x1f5   :  { %v1964_v40 = vrot.slane %v362_v56, %v378_v59 }
 0x1f6   :  { %1265 = vmatpush3.bf16.msra.mxu0 %v1552_v30  ;;  %1305 = vmatpush3.bf16.msra.mxu1 %v1554_v31 }
 0x1f7   :  { %1266 = vmatprep.subr.bf16.mxu0 %v1555_v32  ;;  %1306 = vmatprep.subr.bf16.mxu1 %v1557_v33 }
 0x1f8   :  { %597 = vmatmul.mubr.bf16.gmra.mrb[16].mxu0 %v328_v22  ;;  %670 = vmatmul.mubr.bf16.gmra.mrb[16].mxu1 %v328_v22 }
 0x1f9   :  { %606 = vmatprep.mubr.bf16.mxu0 %v1587_v24  ;;  %679 = vmatprep.mubr.bf16.mxu1 %v1587_v24  ;;  %v1563_v24 = vld [vmem:[%s2038_s6 + $0x70] sm:$0xff]  }
 0x1fa   :  { %1267 = vmatpush3.bf16.msra.mxu0 %v1556_v34  ;;  %1307 = vmatpush3.bf16.msra.mxu1 %v1558_v35 }
 0x1fb   :  { %1268 = vmatprep.subr.bf16.mxu0 %v1559_v36  ;;  %1308 = vmatprep.subr.bf16.mxu1 %v1561_v37 }
 0x1fe   :  { %1269 = vmatpush3.bf16.msra.mxu0 %v1560_v38  ;;  %1309 = vmatpush3.bf16.msra.mxu1 %v1562_v39 }
 0x1ff   :  { %1270 = vmatprep.subr.bf16.mxu0 %v1563_v24  ;;  %1310 = vmatprep.subr.bf16.mxu1 %v1565_v41 }
 0x200   :  { %607 = vmatmul.mubr.bf16.gmra.mrb[20].mxu0 %v329_v29  ;;  %680 = vmatmul.mubr.bf16.gmra.mrb[20].mxu1 %v329_v29 }
 0x202   :  { %1271 = vmatpush3.bf16.msra.mxu0 %v1564_v43  ;;  %1311 = vmatpush3.bf16.msra.mxu1 %v1566_v44 }
 0x203   :  { %1272 = vmatprep.subr.bf16.mxu0 %v1567_v45  ;;  %1312 = vmatprep.subr.bf16.mxu1 %v1569_v46 }
 0x206   :  { %1273 = vmatpush3.bf16.msra.mxu0 %v1568_v48  ;;  %1313 = vmatpush3.bf16.msra.mxu1 %v1570_v49 }
 0x2bb   :  { %v578_v0 = vpop.f32.mrb[8].mxu0  ;;  %v651_v2 = vpop.f32.mrb[8].mxu1 }
 0x2bc   :  { %v579_v42 = vadd.f32 %v578_v0, %v1958_v60  ;;  %v652_v3 = vadd.f32 %v651_v2, %v1960_v61  ;;  %v580_v4 = vpop.f32.mrb[9].mxu0  ;;  %v653_v5 = vpop.f32.mrb[9].mxu1 }
 0x2bd   :  { %v581_v6 = vadd.f32 %v580_v4, %v1962_v62  ;;  %v654_v7 = vadd.f32 %v653_v5, %v1964_v40  ;;  %v582_v47 = vpop.f32.mrb[10].mxu0  ;;  %v655_v50 = vpop.f32.mrb[10].mxu1 }
 0x2be   :  { %v583_v8 = vadd.f32 %v582_v47, %v1958_v60  ;;  %v656_v9 = vadd.f32 %v655_v50, %v1960_v61  ;;  %v584_v10 = vpop.f32.mrb[11].mxu0  ;;  %v657_v11 = vpop.f32.mrb[11].mxu1  ;;  %v690_v13 = vmax.f32 %v579_v42, 0.0  ;;  %v692_v14 = vmax.f32 %v652_v3, 0.0 }
 0x2bf   :  { %v585_v55 = vadd.f32 %v584_v10, %v1962_v62  ;;  %v658_v12 = vadd.f32 %v657_v11, %v1964_v40  ;;  %v691_v16 = vmax.f32 %v581_v6, 0.0  ;;  %v693_v17 = vmax.f32 %v654_v7, 0.0 }
 0x2c0   :  { %v694_v15 = vmax.f32 %v583_v8, 0.0  ;;  %v696_v58 = vmax.f32 %v656_v9, 0.0 }
 0x2c1   :  { %v695_v18 = vmax.f32 %v585_v55, 0.0  ;;  %v697_v19 = vmax.f32 %v658_v12, 0.0 }
 0x2c2   :  { %v722_v20 = vpack.c.bf16 %v694_v15, %v690_v13  ;;  %v724_v21 = vpack.c.bf16 %v696_v58, %v692_v14 }
 0x2c3   :  { %v723_v22 = vpack.c.bf16 %v695_v18, %v691_v16  ;;  %v725_v23 = vpack.c.bf16 %v697_v19, %v693_v17  ;;  %v588_v63 = vpop.f32.mrb[12].mxu0  ;;  %v661_v25 = vpop.f32.mrb[12].mxu1 }
 0x2c4   :  { %v589_v26 = vadd.f32 %v588_v63, %v1958_v60  ;;  %v662_v1 = vadd.f32 %v661_v25, %v1960_v61  ;;  %v590_v27 = vpop.f32.mrb[13].mxu0  ;;  %v663_v28 = vpop.f32.mrb[13].mxu1 }
 0x2c5   :  { %v591_v29 = vadd.f32 %v590_v27, %v1962_v62  ;;  %v664_v30 = vadd.f32 %v663_v28, %v1964_v40  ;;  %v592_v31 = vpop.f32.mrb[14].mxu0  ;;  %v665_v32 = vpop.f32.mrb[14].mxu1  ;;  %1033 = vmatprep.mubr.bf16.mxu0 %v723_v22  ;;  %1098 = vmatprep.mubr.bf16.mxu1 %v725_v23 }
 0x2c6   :  { %v593_v33 = vadd.f32 %v592_v31, %v1958_v60  ;;  %v666_v34 = vadd.f32 %v665_v32, %v1960_v61  ;;  %v594_v35 = vpop.f32.mrb[15].mxu0  ;;  %v667_v36 = vpop.f32.mrb[15].mxu1  ;;  %1034 = vmatmul.mubr.bf16.vlgmr.msra.gmra.mrb[24].mxu0 %v722_v20  ;;  %1099 = vmatmul.mubr.bf16.vlgmr.msra.gmra.mrb[24].mxu1 %v724_v21  ;;  %v698_v39 = vmax.f32 %v589_v26, 0.0  ;;  %v700_v24 = vmax.f32 %v662_v1, 0.0 }
 0x2c7   :  { %v595_v37 = vadd.f32 %v594_v35, %v1962_v62  ;;  %v668_v38 = vadd.f32 %v667_v36, %v1964_v40  ;;  %v699_v44 = vmax.f32 %v591_v29, 0.0  ;;  %v701_v45 = vmax.f32 %v664_v30, 0.0 }
 0x2c8   :  { %v702_v41 = vmax.f32 %v593_v33, 0.0  ;;  %v704_v43 = vmax.f32 %v666_v34, 0.0 }
 0x2c9   :  { %v703_v46 = vmax.f32 %v595_v37, 0.0  ;;  %v705_v48 = vmax.f32 %v668_v38, 0.0 }
 0x2ca   :  { %v726_v49 = vpack.c.bf16 %v702_v41, %v698_v39  ;;  %v728_v51 = vpack.c.bf16 %v704_v43, %v700_v24 }
 0x2cb   :  { %v727_v52 = vpack.c.bf16 %v703_v46, %v699_v44  ;;  %v729_v53 = vpack.c.bf16 %v705_v48, %v701_v45  ;;  %v598_v54 = vpop.f32.mrb[16].mxu0  ;;  %v671_v56 = vpop.f32.mrb[16].mxu1 }
 0x2cc   :  { %v599_v57 = vadd.f32 %v598_v54, %v1958_v60  ;;  %v672_v59 = vadd.f32 %v671_v56, %v1960_v61  ;;  %v600_v0 = vpop.f32.mrb[17].mxu0  ;;  %v673_v2 = vpop.f32.mrb[17].mxu1 }
 0x2cd   :  { %v601_v42 = vadd.f32 %v600_v0, %v1962_v62  ;;  %v674_v3 = vadd.f32 %v673_v2, %v1964_v40  ;;  %v602_v4 = vpop.f32.mrb[18].mxu0  ;;  %v675_v5 = vpop.f32.mrb[18].mxu1  ;;  %1041 = vmatprep.mubr.bf16.mxu0 %v727_v52  ;;  %1106 = vmatprep.mubr.bf16.mxu1 %v729_v53 }
 0x2ce   :  { %v603_v6 = vadd.f32 %v602_v4, %v1958_v60  ;;  %v676_v7 = vadd.f32 %v675_v5, %v1960_v61  ;;  %v604_v47 = vpop.f32.mrb[19].mxu0  ;;  %v677_v50 = vpop.f32.mrb[19].mxu1  ;;  %1042 = vmatmul.mubr.bf16.gmra.mrb[28].mxu0 %v726_v49  ;;  %1107 = vmatmul.mubr.bf16.gmra.mrb[28].mxu1 %v728_v51  ;;  %v706_v10 = vmax.f32 %v599_v57, 0.0  ;;  %v708_v11 = vmax.f32 %v672_v59, 0.0 }
 0x2cf   :  { %v605_v8 = vadd.f32 %v604_v47, %v1962_v62  ;;  %v678_v9 = vadd.f32 %v677_v50, %v1964_v40  ;;  %v707_v13 = vmax.f32 %v601_v42, 0.0  ;;  %v709_v14 = vmax.f32 %v674_v3, 0.0 }
 0x2d0   :  { %v710_v55 = vmax.f32 %v603_v6, 0.0  ;;  %v712_v12 = vmax.f32 %v676_v7, 0.0 }
 0x2d1   :  { %v711_v15 = vmax.f32 %v605_v8, 0.0  ;;  %v713_v58 = vmax.f32 %v678_v9, 0.0 }
 0x2d2   :  { %v730_v16 = vpack.c.bf16 %v710_v55, %v706_v10  ;;  %v732_v17 = vpack.c.bf16 %v712_v12, %v708_v11 }
 0x2d3   :  { %v731_v18 = vpack.c.bf16 %v711_v15, %v707_v13  ;;  %v733_v19 = vpack.c.bf16 %v713_v58, %v709_v14  ;;  %v608_v20 = vpop.f32.mrb[20].mxu0  ;;  %v681_v21 = vpop.f32.mrb[20].mxu1 }
 0x2d4   :  { %v609_v22 = vadd.f32 %v608_v20, %v1958_v60  ;;  %v682_v23 = vadd.f32 %v681_v21, %v1960_v61  ;;  %v610_v63 = vpop.f32.mrb[21].mxu0  ;;  %v683_v25 = vpop.f32.mrb[21].mxu1 }
 0x2d5   :  { %v611_v26 = vadd.f32 %v610_v63, %v1962_v62  ;;  %v684_v1 = vadd.f32 %v683_v25, %v1964_v40  ;;  %v612_v27 = vpop.f32.mrb[22].mxu0  ;;  %v685_v28 = vpop.f32.mrb[22].mxu1  ;;  %1049 = vmatprep.mubr.bf16.mxu0 %v731_v18  ;;  %1114 = vmatprep.mubr.bf16.mxu1 %v733_v19 }
 0x2d6   :  { %v613_v29 = vadd.f32 %v612_v27, %v1958_v60  ;;  %v686_v30 = vadd.f32 %v685_v28, %v1960_v61  ;;  %v614_v31 = vpop.f32.mrb[23].mxu0  ;;  %v687_v32 = vpop.f32.mrb[23].mxu1  ;;  %1050 = vmatmul.mubr.bf16.gmra.mrb[32].mxu0 %v730_v16  ;;  %1115 = vmatmul.mubr.bf16.gmra.mrb[32].mxu1 %v732_v17  ;;  %v714_v35 = vmax.f32 %v609_v22, 0.0  ;;  %v716_v36 = vmax.f32 %v682_v23, 0.0 }
 0x2d7   :  { %v615_v33 = vadd.f32 %v614_v31, %v1962_v62  ;;  %v688_v34 = vadd.f32 %v687_v32, %v1964_v40  ;;  %v715_v39 = vmax.f32 %v611_v26, 0.0  ;;  %v717_v24 = vmax.f32 %v684_v1, 0.0  ;;  %v2001_v40 = vld [vmem:[%s2042_s7] ss:$0 sm:$0xff] }
 0x2d8   :  { %v718_v37 = vmax.f32 %v613_v29, 0.0  ;;  %v720_v38 = vmax.f32 %v686_v30, 0.0 }
 0x2d9   :  { %v719_v41 = vmax.f32 %v615_v33, 0.0  ;;  %v721_v43 = vmax.f32 %v688_v34, 0.0 }
 0x2da   :  { %v734_v44 = vpack.c.bf16 %v718_v37, %v714_v35  ;;  %v736_v60 = vpack.c.bf16 %v720_v38, %v716_v36 }
 0x2db   :  { %v735_v45 = vpack.c.bf16 %v719_v41, %v715_v39  ;;  %v737_v61 = vpack.c.bf16 %v721_v43, %v717_v24 }
 0x2dd   :  { %1057 = vmatprep.mubr.bf16.mxu0 %v735_v45  ;;  %1122 = vmatprep.mubr.bf16.mxu1 %v737_v61 }
 0x2de   :  { %1058 = vmatmul.mubr.bf16.gmra.mrb[36].mxu0 %v734_v44  ;;  %1123 = vmatmul.mubr.bf16.gmra.mrb[36].mxu1 %v736_v60 }
 0x399   :  { %v1274_v46 = vpop.f32.mrb[24].mxu0  ;;  %v1314_v62 = vpop.f32.mrb[24].mxu1 }
 0x39a   :  { %v1275_v48 = vpop.f32.mrb[25].mxu0  ;;  %v1315_v49 = vpop.f32.mrb[25].mxu1 }
 0x39b   :  { %v1276_v51 = vadd.f32 %v1275_v48, %v1274_v46  ;;  %v1316_v52 = vadd.f32 %v1315_v49, %v1314_v62  ;;  %v1277_v53 = vpop.f32.mrb[26].mxu0  ;;  %v1317_v54 = vpop.f32.mrb[26].mxu1 }
 0x39c   :  { %v1278_v56 = vpop.f32.mrb[27].mxu0  ;;  %v1318_v57 = vpop.f32.mrb[27].mxu1 }
 0x39d   :  { %v1036_v59 = vadd.f32 %v1276_v51, %v2001_v40  ;;  %v1279_v0 = vadd.f32 %v1278_v56, %v1277_v53  ;;  %v1319_v2 = vadd.f32 %v1318_v57, %v1317_v54 }
 0x39f   :  { %v1101_v42 = vadd.f32 %v1316_v52, %v1036_v59  ;;  %v1039_v3 = vadd.f32 %v1279_v0, %v2001_v40 }
 0x3a1   :  { %1131 = vst [vmem:[%s2043_s8] sm:$0xff] %v1101_v42  ;;  %v1104_v4 = vadd.f32 %v1319_v2, %v1039_v3  ;;  %v1280_v5 = vpop.f32.mrb[28].mxu0  ;;  %v1320_v6 = vpop.f32.mrb[28].mxu1 }
 0x3a2   :  { %v1281_v7 = vpop.f32.mrb[29].mxu0  ;;  %v1321_v47 = vpop.f32.mrb[29].mxu1 }
 0x3a3   :  { %1132 = vst [vmem:[%s2043_s8 + $0x8] sm:$0xff] %v1104_v4  ;;  %v1282_v50 = vadd.f32 %v1281_v7, %v1280_v5  ;;  %v1322_v8 = vadd.f32 %v1321_v47, %v1320_v6  ;;  %v1283_v9 = vpop.f32.mrb[30].mxu0  ;;  %v1323_v10 = vpop.f32.mrb[30].mxu1 }
 0x3a4   :  { %v1284_v11 = vpop.f32.mrb[31].mxu0  ;;  %v1324_v55 = vpop.f32.mrb[31].mxu1 }
 0x3a5   :  { %v1044_v12 = vadd.f32 %v1282_v50, %v2001_v40  ;;  %v1285_v13 = vadd.f32 %v1284_v11, %v1283_v9  ;;  %v1325_v14 = vadd.f32 %v1324_v55, %v1323_v10 }
 0x3a7   :  { %v1109_v15 = vadd.f32 %v1322_v8, %v1044_v12  ;;  %v1047_v58 = vadd.f32 %v1285_v13, %v2001_v40 }
 0x3a9   :  { %1133 = vst [vmem:[%s2043_s8 + $0x10] sm:$0xff] %v1109_v15  ;;  %v1112_v16 = vadd.f32 %v1325_v14, %v1047_v58  ;;  %v1286_v17 = vpop.f32.mrb[32].mxu0  ;;  %v1326_v18 = vpop.f32.mrb[32].mxu1 }
 0x3aa   :  { %v1287_v19 = vpop.f32.mrb[33].mxu0  ;;  %v1327_v20 = vpop.f32.mrb[33].mxu1 }
 0x3ab   :  { %1134 = vst [vmem:[%s2043_s8 + $0x18] sm:$0xff] %v1112_v16  ;;  %v1288_v21 = vadd.f32 %v1287_v19, %v1286_v17  ;;  %v1328_v22 = vadd.f32 %v1327_v20, %v1326_v18  ;;  %v1289_v23 = vpop.f32.mrb[34].mxu0  ;;  %v1329_v63 = vpop.f32.mrb[34].mxu1 }
 0x3ac   :  { %v1290_v25 = vpop.f32.mrb[35].mxu0  ;;  %v1330_v26 = vpop.f32.mrb[35].mxu1 }
 0x3ad   :  { %v1052_v1 = vadd.f32 %v1288_v21, %v2001_v40  ;;  %v1291_v27 = vadd.f32 %v1290_v25, %v1289_v23  ;;  %v1331_v28 = vadd.f32 %v1330_v26, %v1329_v63 }
 0x3af   :  { %v1117_v29 = vadd.f32 %v1328_v22, %v1052_v1  ;;  %v1055_v30 = vadd.f32 %v1291_v27, %v2001_v40 }
 0x3b1   :  { %1135 = vst [vmem:[%s2043_s8 + $0x20] sm:$0xff] %v1117_v29  ;;  %v1120_v31 = vadd.f32 %v1331_v28, %v1055_v30  ;;  %v1292_v32 = vpop.f32.mrb[36].mxu0  ;;  %v1332_v33 = vpop.f32.mrb[36].mxu1 }
 0x3b2   :  { %v1293_v34 = vpop.f32.mrb[37].mxu0  ;;  %v1333_v35 = vpop.f32.mrb[37].mxu1 }
 0x3b3   :  { %1136 = vst [vmem:[%s2043_s8 + $0x28] sm:$0xff] %v1120_v31  ;;  %v1294_v36 = vadd.f32 %v1293_v34, %v1292_v32  ;;  %v1334_v37 = vadd.f32 %v1333_v35, %v1332_v33  ;;  %v1295_v38 = vpop.f32.mrb[38].mxu0  ;;  %v1335_v39 = vpop.f32.mrb[38].mxu1 }
 0x3b4   :  { %v1296_v24 = vpop.f32.mrb[39].mxu0  ;;  %v1336_v41 = vpop.f32.mrb[39].mxu1 }
 0x3b5   :  { %v1060_v43 = vadd.f32 %v1294_v36, %v2001_v40  ;;  %v1297_v44 = vadd.f32 %v1296_v24, %v1295_v38  ;;  %v1337_v60 = vadd.f32 %v1336_v41, %v1335_v39 }
 0x3b7   :  { %v1125_v45 = vadd.f32 %v1334_v37, %v1060_v43  ;;  %v1063_v61 = vadd.f32 %v1297_v44, %v2001_v40 }
 0x3b9   :  { %1137 = vst [vmem:[%s2043_s8 + $0x30] sm:$0xff] %v1125_v45  ;;  %v1128_v46 = vadd.f32 %v1337_v60, %v1063_v61 }
 0x3bb   :  { %1138 = vst [vmem:[%s2043_s8 + $0x38] sm:$0xff] %v1128_v46 }

</bundles_post_ra>
